<compile_context>
chip_gen: v7x
topology: tpu7x:2x2x1
jax: 0.10.0
libtpu: 0.0.40
codegen_flags: <defaults>
</compile_context>

<pallas_src>
import functools
import numpy as np
import jax
import jax.numpy as jnp
from jax import lax
from jax.experimental import pallas as pl
from jax.experimental.pallas import tpu as pltpu


# ----------------------------------------------------------------------------
# Pallas kernel: one (batch, channel-tile, row-tile) block per grid step.
# ----------------------------------------------------------------------------
def _upsample_kernel(x_ref, sel_ref, o_ref, *, sh, new_w, split_store,
                     precision, acc_dtype):
    """x_ref:   (1, tc, th, w_in)
       sel_ref: (w_in, new_w)        if split_store
                (w_in, sh*new_w)     otherwise (sh-tiled selection matrix)
       o_ref:   (1, tc, th, sh*new_w)
    """
    _, tc, th, w = x_ref.shape
    # th is sublane-aligned (or tc == 1), so this reshape is layout-free.
    x = x_ref[...].reshape(tc * th, w)
    y = jnp.dot(x, sel_ref[...], preferred_element_type=acc_dtype,
                precision=precision)
    y = y.astype(o_ref.dtype)
    if split_store:
        # One small matmul; replicate rows by storing the same result into the
        # sh lane-aligned (new_w % 128 == 0) column slices of the output block.
        y4 = y.reshape(1, tc, th, new_w)
        for a in range(sh):                       # static Python loop
            o_ref[:, :, :, a * new_w:(a + 1) * new_w] = y4
    else:
        o_ref[...] = y.reshape(1, tc, th, sh * new_w)


# ----------------------------------------------------------------------------
# Tiling / VMEM budgeting helpers
# ----------------------------------------------------------------------------
def _divisors(v):
    return [d for d in range(1, v + 1) if v % d == 0]


def _vmem_capacity_bytes():
    cap = 64 << 20                      # conservative fallback (v7x-sized)
    try:
        info = pltpu.get_tpu_info()
        for name in ("vmem_capacity_bytes", "vmem_size_bytes", "vmem_bytes"):
            v = getattr(info, name, None)
            if v:
                cap = int(v)
                break
    except Exception:
        pass
    return cap


def _pick_tiles(n, c, h, block_ws_bytes, budget_bytes, sublane):
    """Largest (tc, th) whose double-buffered working set fits `budget_bytes`,
    preferring configurations with >= 4 (else >= 2) total grid steps so both
    TensorCores get work and DMA/compute pipelining has depth."""
    h_cands = [d for d in _divisors(h) if d % sublane == 0]
    if not h_cands:
        # No sublane-aligned row tile exists: take the whole (un-tiled) H and a
        # single channel per block so the in-kernel reshape stays layout-free.
        return 1, h
    c_cands = _divisors(c)
    feasible = [(tc, th) for tc in c_cands for th in h_cands
                if block_ws_bytes(tc, th) <= budget_bytes]
    if not feasible:
        # Nothing fits the budget: best effort with the smallest block.
        return min(c_cands), min(h_cands)

    def steps(t):
        tc, th = t
        return n * (c // tc) * (h // th)

    for min_steps in (4, 2):
        sub = [t for t in feasible if steps(t) >= min_steps]
        if sub:
            feasible = sub
            break
    return max(feasible, key=lambda t: (t[0] * t[1], t[1]))


# ----------------------------------------------------------------------------
# Wrapper: PyTorch F.interpolate(mode='nearest') semantics, NCHW in / NCHW out.
# ----------------------------------------------------------------------------
def upsample_nearest(x, scale_factor=None, size=None, *, vmem_ws_budget_bytes=None):
    n, c, h, w = x.shape
    if size:
        new_h, new_w = int(size[0]), int(size[1])
    elif scale_factor:
        if isinstance(scale_factor, (tuple, list)):
            sf_h, sf_w = scale_factor
        else:
            sf_h = sf_w = scale_factor
        new_h, new_w = int(h * sf_h), int(w * sf_w)
    else:
        raise RuntimeError('error args.')

    if new_h % h != 0:
        # TODO(synk): non-integer height scaling (general nearest row gather) is
        # not implemented; pcdet's BaseBEVBackbone only uses integer strides.
        raise NotImplementedError('output H must be an integer multiple of input H')
    sh = new_h // h

    itemsize = jnp.dtype(x.dtype).itemsize
    out_dtype = x.dtype
    # <=16-bit: accumulate straight in the output dtype (exact: one 1.0 per
    # column), halving MXU-result vregs.  f32: keep f32 accumulation.
    acc_dtype = jnp.float32 if itemsize >= 4 else out_dtype
    acc_itemsize = jnp.dtype(acc_dtype).itemsize
    # HIGHEST pins the multi-pass f32 MXU lowering => bit-exact copy for f32.
    precision = lax.Precision.HIGHEST if itemsize >= 4 else None

    # 0/1 selection matrix implementing torch 'nearest' along W
    # (src = floor(j * W_in / W_out); works for non-integer W ratios too).
    j = np.arange(new_w)
    src = (j * w) // new_w
    sel_np = np.zeros((w, new_w), dtype=np.float32)
    sel_np[src, j] = 1.0

    split_store = (sh > 1) and (new_w % 128 == 0)
    if (not split_store) and sh > 1:
        # Keep the single store lane-dense: tile sel sh times along columns so
        # the whole (tc*th, sh*new_w) block is written in one shot.
        sel_np = np.tile(sel_np, (1, sh))
    sel = jnp.asarray(sel_np, dtype=x.dtype)
    sel_cols = sel.shape[1]
    out_cols = sh * new_w

    # Generation-aware VMEM budget (v5e/v6e: 128 MiB, v7x: 64 MiB per TC).
    cap = _vmem_capacity_bytes()
    vmem_limit = min(cap * 3 // 4, 100 << 20)
    ws_budget = vmem_ws_budget_bytes
    if ws_budget is None:
        ws_budget = min(cap * 55 // 100, 64 << 20)

    sel_bytes = 2 * w * sel_cols * itemsize          # sel block (double-buffered)

    def block_ws(tc, th):
        rows = tc * th
        return (2 * rows * w * itemsize              # input block, double-buffered
                + 2 * rows * out_cols * itemsize     # output block, double-buffered
                + rows * sel_cols * acc_itemsize     # dot result / accumulator
                + sel_bytes)

    sublane = max(8, 8 * (4 // max(1, min(itemsize, 4))))   # 8 f32 / 16 bf16 / 32 i8
    tc, th = _pick_tiles(n, c, h, block_ws, ws_budget, sublane)

    grid = (n, c // tc, h // th)
    flops = 2 * n * c * h * w * sel_cols
    bytes_accessed = (n * c * h * w + n * c * h * out_cols) * itemsize \
        + w * sel_cols * itemsize

    kernel = functools.partial(_upsample_kernel, sh=sh, new_w=new_w,
                               split_store=split_store, precision=precision,
                               acc_dtype=acc_dtype)

    out = pl.pallas_call(
        kernel,
        out_shape=jax.ShapeDtypeStruct((n, c, h, out_cols), x.dtype),
        grid=grid,
        in_specs=[
            pl.BlockSpec((1, tc, th, w), lambda ni, ci, hi: (ni, ci, hi, 0)),
            # Constant block index: the sel tile is fetched once and reused
            # across grid steps (block index never changes), so it costs a
            # single small HBM read.
            pl.BlockSpec((w, sel_cols), lambda ni, ci, hi: (0, 0)),
        ],
        out_specs=pl.BlockSpec((1, tc, th, out_cols),
                               lambda ni, ci, hi: (ni, ci, hi, 0)),
        compiler_params=pltpu.CompilerParams(
            dimension_semantics=("parallel", "parallel", "parallel"),
            vmem_limit_bytes=int(vmem_limit)),
        cost_estimate=pl.CostEstimate(flops=flops, transcendentals=0,
                                      bytes_accessed=bytes_accessed),
    )(x, sel)

    # (n, c, h, sh*new_w) is row-major identical to (n, c, h*sh, new_w):
    # this reshape is a free bitcast, not an extra HBM pass.
    return out.reshape(n, c, new_h, new_w)


class Upsample:
    """Pallas port of pcdet's Upsample module (mode='nearest' only)."""

    def __init__(self, scale_factor=None, size=None, mode='nearest'):
        if mode != 'nearest':
            # TODO(synk): only 'nearest' is implemented (the BaseBEVBackbone use case).
            raise NotImplementedError("only mode='nearest' is supported")
        self.scale_factor = scale_factor
        self.size = size
        self.mode = mode

    def __call__(self, x):
        if self.size:
            return upsample_nearest(x, size=self.size)
        elif self.scale_factor:
            return upsample_nearest(x, scale_factor=self.scale_factor)
        else:
            raise RuntimeError('error args.')


# ----------------------------------------------------------------------------
# Pure-numpy reference (exactly torch's 'nearest': src = floor(dst*in/out))
# ----------------------------------------------------------------------------
def _ref_nearest(x, new_h, new_w):
    xn = np.asarray(x)
    n, c, h, w = xn.shape
    ih = (np.arange(new_h) * h) // new_h
    iw = (np.arange(new_w) * w) // new_w
    return xn[:, :, ih[:, None], iw[None, :]]


if __name__ == "__main__":
    key = jax.random.PRNGKey(0)

    # 1) Integer scale_factor, f32 (BaseBEVBackbone deblock use case).
    #    Full-mantissa values; bit-exact copy required (HIGHEST-precision
    #    selection matmul).  Exercises the sh-tiled-sel path (new_w=32).
    x1 = jax.random.normal(jax.random.fold_in(key, 1), (2, 4, 16, 16), jnp.float32)
    y1 = jax.block_until_ready(jax.jit(lambda t: Upsample(scale_factor=2)(t))(x1))
    assert y1.shape == (2, 4, 32, 32), y1.shape
    np.testing.assert_array_equal(np.asarray(y1), _ref_nearest(x1, 32, 32))

    # 2) Explicit `size` with non-multiple width + tiny VMEM budget to force
    #    multi-step channel/row tiling through the grid.
    x2 = jax.random.normal(jax.random.fold_in(key, 2), (1, 6, 24, 20), jnp.float32)
    y2 = jax.block_until_ready(
        jax.jit(lambda t: upsample_nearest(t, size=(48, 36),
                                           vmem_ws_budget_bytes=32 * 1024))(x2))
    assert y2.shape == (1, 6, 48, 36), y2.shape
    np.testing.assert_allclose(np.asarray(y2), _ref_nearest(x2, 48, 36),
                               rtol=1e-6, atol=1e-6)

    # 3) new_w % 128 == 0 -> split-store path (untiled sel, sh column-slice stores).
    x3 = jax.random.normal(jax.random.fold_in(key, 3), (1, 2, 16, 64), jnp.float32)
    y3 = jax.block_until_ready(jax.jit(lambda t: Upsample(scale_factor=2)(t))(x3))
    assert y3.shape == (1, 2, 32, 128), y3.shape
    np.testing.assert_array_equal(np.asarray(y3), _ref_nearest(x3, 32, 128))

    # 4) bf16 input: accumulate in bf16 (exact for a 0/1 selection), 16-row sublanes.
    x4 = jax.random.normal(jax.random.fold_in(key, 4), (1, 4, 32, 64), jnp.bfloat16)
    y4 = jax.block_until_ready(jax.jit(lambda t: Upsample(scale_factor=2)(t))(x4))
    assert y4.shape == (1, 4, 64, 128), y4.shape
    np.testing.assert_array_equal(np.asarray(y4).astype(np.float32),
                                  _ref_nearest(x4, 64, 128).astype(np.float32))

    print("KERNEL_OK")
</pallas_src>

<mosaic_0001>
module attributes {stable_mosaic.version = 11 : i64} {
  func.func @_upsample_kernel(%arg0: i32, %arg1: i32, %arg2: i32, %arg3: memref<1x2x16x16xf32, #tpu.memory_space<vmem>>, %arg4: memref<16x64xf32, #tpu.memory_space<vmem>>, %arg5: memref<1x2x16x64xf32, #tpu.memory_space<vmem>>) attributes {dimension_semantics = [#tpu.dimension_semantics<parallel>, #tpu.dimension_semantics<parallel>, #tpu.dimension_semantics<parallel>], iteration_bounds = array<i64: 2, 2, 1>, scalar_prefetch = 0 : i64, scratch_operands = 0 : i64, tpu.core_type = #tpu.core_type<tc>, window_params = [{transform_indices = @transform_0, window_bounds = array<i64: 1, 2, 16, 16>}, {pipeline_mode = #tpu.pipeline_mode<synchronous>, transform_indices = @transform_1, window_bounds = array<i64: 16, 64>}, {transform_indices = @transform_2, window_bounds = array<i64: 1, 2, 16, 64>}]} {
    %c0 = arith.constant 0 : index
    %c0_0 = arith.constant 0 : index
    %c0_1 = arith.constant 0 : index
    %c0_2 = arith.constant 0 : index
    %0 = vector.load %arg3[%c0, %c0_0, %c0_1, %c0_2] : memref<1x2x16x16xf32, #tpu.memory_space<vmem>>, vector<1x2x16x16xf32>
    %1 = vector.shape_cast %0 : vector<1x2x16x16xf32> to vector<32x16xf32>
    %c0_3 = arith.constant 0 : index
    %c0_4 = arith.constant 0 : index
    %2 = vector.load %arg4[%c0_3, %c0_4] : memref<16x64xf32, #tpu.memory_space<vmem>>, vector<16x64xf32>
    %cst = arith.constant dense<0.000000e+00> : vector<32x64xf32>
    %3 = tpu.matmul %1, %2, %cst {dimension_numbers = #tpu.dot_dimension_numbers<[1], [0], [0], [1], [0, 0, 1, 1], [], []>, precision = #tpu.contract_precision<fp32>} : vector<32x16xf32>, vector<16x64xf32>, vector<32x64xf32> -> vector<32x64xf32>
    %4 = vector.shape_cast %3 : vector<32x64xf32> to vector<1x2x16x64xf32>
    %c0_5 = arith.constant 0 : index
    %c0_6 = arith.constant 0 : index
    %c0_7 = arith.constant 0 : index
    %c0_8 = arith.constant 0 : index
    %5 = vector.load %arg5[%c0_5, %c0_6, %c0_7, %c0_8] : memref<1x2x16x64xf32, #tpu.memory_space<vmem>>, vector<1x2x16x64xf32>
    tpu.vector_store %arg5[%c0_5, %c0_6, %c0_7, %c0_8], %4 {strides = array<i32>} : memref<1x2x16x64xf32, #tpu.memory_space<vmem>>, vector<1x2x16x64xf32>,
    return
  }
  func.func @transform_0(%arg0: i32, %arg1: i32, %arg2: i32) -> (i32, i32, i32, i32) {
    %c0_i32 = arith.constant 0 : i32
    %c0_i32_0 = arith.constant 0 : i32
    return %arg0, %arg1, %arg2, %c0_i32 : i32, i32, i32, i32
  }
  func.func @transform_1(%arg0: i32, %arg1: i32, %arg2: i32) -> (i32, i32) {
    %c0_i32 = arith.constant 0 : i32
    %c0_i32_0 = arith.constant 0 : i32
    %c0_i32_1 = arith.constant 0 : i32
    return %c0_i32, %c0_i32_0 : i32, i32
  }
  func.func @transform_2(%arg0: i32, %arg1: i32, %arg2: i32) -> (i32, i32, i32, i32) {
    %c0_i32 = arith.constant 0 : i32
    %c0_i32_0 = arith.constant 0 : i32
    return %arg0, %arg1, %arg2, %c0_i32 : i32, i32, i32, i32
  }
}

</mosaic_0001>

<bundles_post_ra>
// kernel: _lambda_.1
= control target key start
LH: loop header
LB: loop body
LE: loop exit
PB: predicated region body
PF: predicated region fallthrough
CT: control target
= control target key end

     0   :  { %s1566_s0 = inlined_call_operand.hbm [shape: f32[2,4,16,16], index: 0, kind: input, shape index: {}]   ;;  %s1567_s1 = inlined_call_operand.hbm [shape: f32[16,64], index: 1, kind: input, shape index: {}]   ;;  %s1568_s2 = inlined_call_operand.vmem [shape: f32[2,4,16,64], index: 2, kind: output, shape index: {}]  }
   0x1   :  { %1575 = sst [smem:[#allocation8_spill]] %s1567_s1 }
   0x2   :  { %7 = vsyncpa [#allocation3], 0 }
   0x3   :  { %9 = vsyncpa [#allocation3 + $0x1], 0 }
   0x4   :  { %10 = vsyncpa [#allocation5], 0  ;;  %s1370_s9 = smov 0   ;;  %s1372_s10 = smov 0  }
   0x5   :  { %s1374_s11 = smov 0   ;;  %s1376_s12 = smov 0  }
   0x6   :  { %s1378_s13 = smov 0   ;;  %s1380_s14 = smov 0  }
   0x7   :  { %s1382_s15 = smov 0   ;;  %s1384_s16 = smov 0  }
   0x8 LB: > { %s977_s17 = sadd.s32 4294967295, %s1349_s16   ;;  %p59_p0 = scmp.ne.s32.totalorder %s1325_s10, %s1321_s9  ;;  %s1349_s16 = sphi %s1384_s16, %s16_s16   ;;  %s1345_s15 = sphi %s1382_s15, %s1595_s15   ;;  %s1341_s14 = sphi %s1380_s14, %s1594_s14   ;;  %s1337_s13 = sphi %s1378_s13, %s1593_s13   ;;  %s1333_s12 = sphi %s1376_s12, %s1592_s12   ;;  %s1329_s11 = sphi %s1374_s11, %s1591_s11   ;;  %s1325_s10 = sphi %s1372_s10, %s1590_s10   ;;  %s1321_s9 = sphi %s1370_s9, %s1589_s9  }
   0x9   : > { %p1410_p1 = scmp.eq.s32.totalorder %s977_s17, 0  ;;  %p979_p2 = scmp.ge.s32.totalorder %s1349_s16, 1 }
   0xa   : > { %p121_p3 = scmp.lt.s32.totalorder %s1349_s16, 5  ;;  %s1351_s21 = smov [#allocation4]  }
   0xb   : > { %s1576_s18 = scalar_select %p1410_p1, 1, 0 }
   0xc   : > { %p1418_p4 = por %p1410_p1, %p59_p0  ;;  %p1422_p5 = pnand %p979_p2, %p121_p3 }
   0xd   : > { %s133_s22 = sshll.u32 %s1351_s21, 4  ;;  %s1580_s1 = sld [smem:[#allocation8_spill]]  ;;  %s134_s22 = int_to_ptr.vmem [resolvable:$true] %s133_s22 }
   0xe   : > { %s1577_s19 = scalar_select %p1418_p4, 1, 0 }
   0xf   : > { %s1578_s20 = scalar_select %p1422_p5, 1, 0 }
  0x10   : > { %p1143_p6 = pneg %p1422_p5 }
  0x12   : > { %p1430_p7 = pnand %p1143_p6, %p1410_p1 }
  0x13   : > { %s1221_s26 = scalar_lea.hbm %s1580_s1, 256 }
  0x14   : > { %p1222_p8 = scmp.ne.s32.totalorder %s1580_s1, %s1221_s26  ;;  %p1223_p9 = pneg %p1430_p7 }
  0x15   : > { %p1228_p12 = scmp.lt.u32.totalorder %s1221_s26, %s1580_s1 }
  0x16   : > { %p1224_p10 = pnand %p1223_p9, %p1222_p8 }
  0x18   : > { %p1225_p11 = pneg %p1224_p10 }
  0x1a   : > { %p1230_p13 = pnand %p1228_p12, %p1225_p11 }
  0x1c   : > { %1233 = shalt.err (!%p1230_p13)
}
  0x1d   : > { %s1234_s3 = scalar_lea.vmem %s134_s22, 256  ;;  %p1242_p6 = scmp.lt.s32.totalorder %s134_s22, %s134_s22 }
  0x1e   : > { %p1235_p0 = scmp.ne.s32.totalorder %s134_s22, %s1234_s3  ;;  %p1243_p1 = scmp.lt.s32.totalorder %s1234_s3, %s1234_s3 }
  0x20   : > { %p1237_p2 = pnand %p1235_p0, %p1223_p9  ;;  %p1244_p4 = por %p1243_p1, %p1242_p6 }
  0x22   : > { %p1238_p3 = pneg %p1237_p2 }
  0x24   : > { %p1245_p5 = pnand %p1244_p4, %p1238_p3 }
  0x26   : > { %1248 = shalt.err (!%p1245_p5)
}
  0x27   : > { %s1573_s4 = smov 128   ;;  %s1574_s5 = smov 8  }
  0x28   : > { %1146 = dma.hbm_to_vmem [thread:$0]  (!%p1430_p7), %s1580_s1, 256, %s134_s22, [#allocation5], %s1573_s4, %s1573_s4, %s1574_s5  }
  0x29   : > { %s31_s8 = sadd.s32 1, %s1341_s14  ;;  %s35_s9 = sadd.s32 1, %s1345_s15 }
  0x2a   : > { %p33_p1 = scmp.ge.s32.totalorder %s31_s8, 2  ;;  %s46_s17 = sadd.s32 1, %s1329_s11 }
  0x2b   : > { %p53_p4 = scmp.ne.s32.totalorder %s1329_s11, %s1325_s10  ;;  %p54_p5 = scmp.eq.s32.totalorder %s1349_s16, 0 }
  0x2c   : > { %s1597_s8 = smov (%p33_p1, %s31_s8), 0  ;;  %s1599_s9 = smov (!%p33_p1, %s35_s9), %s1345_s15 }
  0x2d   : > { %s40_s21 = ssub.s32 %s1341_s14, %s1597_s8  ;;  %p37_p8 = scmp.ge.s32.totalorder %s1599_s9, 2 }
  0x2e   : > { %p1152_p9 = scmp.lt.s32.totalorder %s1349_s16, 4  ;;  %p1465_p10 = por %p54_p5, %p53_p4 }
  0x2f   : > { %s147_s22 = sand.u32 1, %s1329_s11   ;;  %s1601_s9 = smov (%p37_p8, %s1599_s9), 0 }
  0x30   : > { %s982_s24 = sshll.u32 %s147_s22, 5  ;;  %s39_s25 = ssub.s32 %s1345_s15, %s1601_s9 }
  0x31   : > { %s41_s26 = sor.u32 %s40_s21, %s39_s25  ;;  %s996_s27 = sshll.u32 %s1341_s14, 2 }
  0x32   : > { %p44_p7 = scmp.eq.s32.totalorder %s41_s26, 0  ;;  %s985_s28 = sshll.u32 %s1345_s15, 3 }
  0x33   : > { %s160_s29 = sadd.s32 %s996_s27, %s985_s28  ;;  %s151_s30 = scalar_lea.vmem [#allocation2], %s982_s24 }
  0x34   : > { %s163_s3 = sshll.u32 %s151_s30, 4  ;;  %s986_s7 = sshll.u32 %s160_s29, 7  ;;  %s1479_s3 = int_to_ptr.vmem [resolvable:$true] %s163_s3 }
  0x35   : > { %s1477_s6 = scalar_select %p44_p7, %s1329_s11, %s46_s17  }
  0x36   : > { %s1484_s1 = scalar_lea.hbm %s1566_s0, %s986_s7  ;;  %p1490_p11 = pnand %p1152_p9, %p1465_p10 }
  0x37   : > { %s1494_s17 = scalar_lea.sflag [#allocation3], %s147_s22  ;;  %s1249_s24 = scalar_lea.hbm %s1484_s1, 512 }
  0x38   : > { %p1250_p12 = scmp.ne.s32.totalorder %s1484_s1, %s1249_s24  ;;  %p1251_p13 = pneg %p1490_p11 }
  0x39   : > { %s1254_s23 = scalar_lea.hbm %s1566_s0, 2048  ;;  %p1255_p3 = scmp.lt.u32.totalorder %s1484_s1, %s1566_s0 }
  0x3a   : > { %p1252_p0 = pnand %p1251_p13, %p1250_p12  ;;  %p1256_p6 = scmp.lt.u32.totalorder %s1254_s23, %s1249_s24 }
  0x3b   : > { %p1258_p4 = scmp.lt.u32.totalorder %s1249_s24, %s1484_s1 }
  0x3c   : > { %p1253_p2 = pneg %p1252_p0  ;;  %p1257_p1 = por %p1256_p6, %p1255_p3 }
  0x3e   : > { %p1259_p5 = por %p1258_p4, %p1257_p1 }
  0x40   : > { %p1260_p8 = pnand %p1259_p5, %p1253_p2 }
  0x42   : > { %1263 = shalt.err (!%p1260_p8)
}
  0x43   : > { %s1264_s22 = scalar_lea.vmem %s1479_s3, 512  ;;  %s1354_s27 = smov [#allocation2]  }
  0x44   : > { %p1265_p9 = scmp.ne.s32.totalorder %s1479_s3, %s1264_s22  ;;  %s1269_s28 = sshll.u32 %s1354_s27, 4  ;;  %s1270_s28 = int_to_ptr.vmem [resolvable:$false] %s1269_s28 }
  0x45   : > { %s1271_s29 = scalar_lea.vmem %s1270_s28, 1024  ;;  %p1272_p12 = scmp.lt.s32.totalorder %s1479_s3, %s1270_s28 }
  0x46   : > { %p1267_p10 = pnand %p1265_p9, %p1251_p13  ;;  %p1273_p0 = scmp.lt.s32.totalorder %s1271_s29, %s1264_s22 }
  0x48   : > { %p1268_p7 = pneg %p1267_p10  ;;  %p1274_p3 = por %p1273_p0, %p1272_p12 }
  0x4a   : > { %p1275_p6 = pnand %p1274_p3, %p1268_p7 }
  0x4c   : > { %1278 = shalt.err (!%p1275_p6)
}
  0x4d   : > { %s1583_s30 = smov 8   ;;  %s1584_s7 = smov 128  }
  0x4e   : > { %1150 = dma.hbm_to_vmem [thread:$0]  (!%p1490_p11), %s1484_s1, 512, %s1479_s3, %s1494_s17, %s1584_s7, %s1584_s7, %s1583_s30  }
  0x4f   : > { %p1585_p13 = scmp.ne.s32.totalorder %s1578_s20, 0 }
  0x50   : > { %s177_s24 = sand.u32 (!%p1585_p13), 1, %s1325_s10   ;;  %p1586_p2 = scmp.ne.s32.totalorder (!%p1585_p13), %s1577_s19, 0 }
  0x51   : > { %175 = sbr.rel (%p1585_p13) target bundleno = 342 (0x156), region = 28  ;;  %s988_s4 = sshll.u32 (!%p1585_p13), %s177_s24, 5 }
  0x52   : > { %s178_s5 = scalar_lea.sflag (!%p1585_p13), [#allocation3], %s177_s24  ;;  %s181_s23 = scalar_lea.vmem (!%p1585_p13), [#allocation2], %s988_s4 }
  0x58   : > { %1312 = dma.done.wait (%p1586_p2), %s178_s5, 512  }
  0x59   : > { %1314 = vsyncadd (%p1586_p2), %s178_s5, 4294966784  ;;  %p1587_p1 = scmp.ne.s32.totalorder %s1576_s18, 0 }
  0x5b   : > { %1316 = dma.done.wait (%p1587_p1), [#allocation5], 256  }
  0x5c   : > { %1318 = vsyncadd (%p1587_p1), [#allocation5], 4294967040  ;;  %vm239_vm0 = vcmask 130048   ;;  %v237_v0 = vld [vmem:[#allocation4] sm:$0xff]  ;;  %v238_v1 = vld [vmem:[#allocation4 + $0x8] sm:$0xff]  ;;  %s990_s1 = sshll.u32 %s1333_s12, 1 }
  0x5d   : > { %v233_v2 = vld [vmem:[%s181_s23] sm:$0xff]  ;;  %v253_v3 = vand.u32 4294901760, %v237_v0  ;;  %v256_v4 = vand.u32 4294901760, %v238_v1  ;;  %v234_v6 = vld [vmem:[%s181_s23 + $0x8] sm:$0xff]  ;;  %v235_v7 = vld [vmem:[%s181_s23 + $0x10] sm:$0xff]  ;;  %p219_p11 = scmp.lt.s32.totalorder %s1337_s13, 1 }
  0x5e   : > { %v241_v5 = vsel %vm239_vm0, %v233_v2, 0  ;;  %v236_v8 = vld [vmem:[%s181_s23 + $0x18] sm:$0xff]  ;;  %v244_v10 = vsel %vm239_vm0, %v234_v6, 0  ;;  %v247_v11 = vsel %vm239_vm0, %v235_v7, 0  ;;  %p221_p4 = scmp.lt.s32.totalorder %s990_s1, 3  ;;  %vm840_vm1 = vcmask 523264  }
  0x5f   : > { %v319_v9 = vand.u32 4294901760, %v241_v5  ;;  %v250_v12 = vsel %vm239_vm0, %v236_v8, 0  ;;  %v1093_v13 = vpack.c.bf16 %v256_v4, %v253_v3  ;;  %v329_v14 = vand.u32 4294901760, %v244_v10  ;;  %s1603_s13 = smov (!%p219_p11, %s1337_s13), 1 }
  0x60   : > { %v339_v15 = vand.u32 4294901760, %v247_v11  ;;  %v361_v16 = vsub.f32 %v237_v0, %v253_v3  ;;  %v368_v18 = vsub.f32 %v238_v1, %v256_v4  ;;  %v349_v19 = vand.u32 4294901760, %v250_v12  ;;  %s1605_s1 = smov (!%p221_p4, %s990_s1), 3  ;;  %s992_s19 = sshll.u32 %s1603_s13, 3 }
  0x61   : > { %v320_v17 = vsub.f32 %v241_v5, %v319_v9  ;;  %1106 = vmatprep.subr.bf16.mxu0 %v1093_v13  ;;  %1094 = vmatprep.subr.bf16.mxu1 %v1093_v13  ;;  %v330_v20 = vsub.f32 %v244_v10, %v329_v14  ;;  %s991_s18 = sshll.u32 %s1605_s1, 1 }
  0x62   : > { %v340_v21 = vsub.f32 %v247_v11, %v339_v15  ;;  %v362_v22 = vand.u32 4294901760, %v361_v16  ;;  %1108 = vmatpush3.bf16.msra.mxu0 %v1093_v13  ;;  %1096 = vmatpush3.bf16.msra.mxu1 %v1093_v13  ;;  %v369_v24 = vand.u32 4294901760, %v368_v18  ;;  %v350_v25 = vsub.f32 %v250_v12, %v349_v19  ;;  %s228_s20 = sadd.s32 %s992_s19, %s991_s18 }
  0x63   : > { %v321_v23 = vand.u32 4294901760, %v320_v17  ;;  %v331_v26 = vand.u32 4294901760, %v330_v20  ;;  %v1101_v42 = vpack.c.bf16 %v368_v18, %v361_v16  ;;  %s993_s3 = sshll.u32 %s228_s20, 3 }
  0x64   : > { %v341_v27 = vand.u32 4294901760, %v340_v21  ;;  %v363_v28 = vsub.f32 %v361_v16, %v362_v22  ;;  %v370_v30 = vsub.f32 %v368_v18, %v369_v24  ;;  %v351_v31 = vand.u32 4294901760, %v350_v25  ;;  %s230_s25 = scalar_lea.vmem %s1568_s2, %s993_s3 }
  0x65   : > { %1067 = vmatprep.mubr.f32.mxu0 %v321_v23  ;;  %v322_v29 = vsub.f32 %v320_v17, %v321_v23  ;;  %v1109_v32 = vpack.c.bf16 %v369_v24, %v362_v22  ;;  %v332_v33 = vsub.f32 %v330_v20, %v331_v26 }
  0x66   : > { %1068 = vmatmul.mubr.f32.vlgmr.msra.gmra.mrb[0].mxu0 %v331_v26  ;;  %v364_v34 = vand.u32 4294901760, %v363_v28  ;;  %v342_v35 = vsub.f32 %v340_v21, %v341_v27  ;;  %v371_v37 = vand.u32 4294901760, %v370_v30  ;;  %v352_v38 = vsub.f32 %v350_v25, %v351_v31 }
  0x67   : > { %v323_v36 = vand.u32 4294901760, %v322_v29  ;;  %1070 = vmatprep.mubr.f32.mxu0 %v341_v27  ;;  %1110 = vmatprep.subr.bf16.mxu0 %v1109_v32  ;;  %v333_v39 = vand.u32 4294901760, %v332_v33 }
  0x68   : > { %1112 = vmatpush3.bf16.msra.mxu0 %v1109_v32  ;;  %v343_v40 = vand.u32 4294901760, %v342_v35  ;;  %v1097_v41 = vpack.c.bf16 %v371_v37, %v364_v34  ;;  %v353_v43 = vand.u32 4294901760, %v352_v38 }
  0x69   : > { %1037 = vmatprep.mubr.f32.mxu1 %v323_v36  ;;  %1114 = vmatprep.subr.bf16.mxu0 %v1093_v13 }
  0x6a   : > { %1038 = vmatmul.mubr.f32.vlgmr.msra.gmra.mrb[0].mxu1 %v333_v39  ;;  %1071 = vmatmul.mubr.f32.gmra.mrb[2].mxu0 %v351_v31 }
  0x6b   : > { %1098 = vmatprep.subr.bf16.mxu1 %v1097_v41  ;;  %1040 = vmatprep.mubr.f32.mxu1 %v343_v40 }
  0x6c   : > { %1100 = vmatpush3.bf16.msra.mxu1 %v1097_v41  ;;  %1077 = vmatprep.mubr.f32.mxu0 %v319_v9 }
  0x6d   : > { %1102 = vmatprep.subr.bf16.mxu1 %v1101_v42 }
  0x6e   : > { %1041 = vmatmul.mubr.f32.gmra.mrb[2].mxu1 %v353_v43  ;;  %1078 = vmatmul.mubr.f32.vlgmr.msra.gmra.mrb[0].mxu0 %v329_v14 }
  0x6f   : > { %1047 = vmatprep.mubr.f32.mxu1 %v319_v9  ;;  %1080 = vmatprep.mubr.f32.mxu0 %v339_v15 }
  0x70   : > { %1116 = vmatpush3.bf16.msra.mxu0 %v1093_v13 }
  0x72   : > { %1048 = vmatmul.mubr.f32.vlgmr.msra.gmra.mrb[0].mxu1 %v329_v14  ;;  %1081 = vmatmul.mubr.f32.gmra.mrb[2].mxu0 %v349_v19 }
  0x73   : > { %1104 = vmatpush3.bf16.msra.mxu1 %v1101_v42  ;;  %1050 = vmatprep.mubr.f32.mxu1 %v339_v15 }
  0x74   : > { %1087 = vmatprep.mubr.f32.mxu0 %v319_v9 }
  0x76   : > { %1051 = vmatmul.mubr.f32.gmra.mrb[2].mxu1 %v349_v19  ;;  %1088 = vmatmul.mubr.f32.vlgmr.msra.gmra.mrb[0].mxu0 %v329_v14 }
  0x77   : > { %1057 = vmatprep.mubr.f32.mxu1 %v320_v17  ;;  %1090 = vmatprep.mubr.f32.mxu0 %v339_v15 }
  0x7a   : > { %1058 = vmatmul.mubr.f32.vlgmr.msra.gmra.mrb[0].mxu1 %v330_v20  ;;  %1091 = vmatmul.mubr.f32.gmra.mrb[2].mxu0 %v349_v19 }
  0x7b   : > { %1060 = vmatprep.mubr.f32.mxu1 %v340_v21 }
  0x7e   : > { %1061 = vmatmul.mubr.f32.gmra.mrb[2].mxu1 %v350_v25 }
 0x149   : > { %v1089_v44 = vpop.f32.mrb[0].mxu0 }
 0x14a   : > { %v818_v45 = vpop.f32.mrb[1].mxu0 }
 0x14d   : > { %v1059_v46 = vpop.f32.mrb[0].mxu1  ;;  %v1092_v47 = vpop.f32.mrb[2].mxu0 }
 0x14e   : > { %v1117_v48 = vadd.f32 %v1089_v44, %v1059_v46  ;;  %v530_v49 = vpop.f32.mrb[1].mxu1  ;;  %v830_v50 = vpop.f32.mrb[3].mxu0 }
 0x14f   : > { %v1118_v51 = vadd.f32 %v818_v45, %v530_v49 }
 0x150   : > { %842 = vst.msk [vmem:[%s230_s25 + $0x8] sm:$0xff] %vm840_vm1, %v1117_v48 }
 0x151   : > { %841 = vst.msk [vmem:[%s230_s25] sm:$0xff] %vm840_vm1, %v1118_v51  ;;  %v1062_v52 = vpop.f32.mrb[2].mxu1 }
 0x152   : > { %v1119_v53 = vadd.f32 %v1092_v47, %v1062_v52  ;;  %v544_v54 = vpop.f32.mrb[3].mxu1 }
 0x153   : > { %v1120_v55 = vadd.f32 %v830_v50, %v544_v54 }
 0x154   : > { %844 = vst.msk [vmem:[%s230_s25 + $0x18] sm:$0xff] %vm840_vm1, %v1119_v53 }
 0x155   : > { %843 = vst.msk [vmem:[%s230_s25 + $0x10] sm:$0xff] %vm840_vm1, %v1120_v55 }
 0x156 PF: > { %s16_s16 = sadd.s32 1, %s1349_s16   ;;  %s1588_s26 = smov %s1601_s9 }
 0x157   : > { %p13_p5 = scmp.ge.s32.totalorder %s16_s16, 6   ;;  %s1589_s9 = smov %s1325_s10 }
 0x158   : > { %s1590_s10 = smov %s1329_s11  ;;  %s1591_s11 = smov %s1477_s6 }
 0x159   : > { %s1592_s12 = smov %s1341_s14  ;;  %s1593_s13 = smov %s1345_s15 }
 0x15a   : > { %s1594_s14 = smov %s1597_s8  ;;  %s1595_s15 = smov %s1588_s26 }
 0x15b   :  { %15 = sbr.rel (!%p13_p5) target bundleno = 8 (0x8), region = 72 }
 0x162   :  { %886 = vsyncpa [#allocation3], 1 }
 0x163   :  { %888 = vsyncpa [#allocation3 + $0x1], 1 }
 0x164   :  { %889 = vsyncpa [#allocation5], 1 }

</bundles_post_ra>
